<compile_context>
chip_gen: v6e
topology: v6e:2x2x1
jax: 0.10.0
libtpu: 0.0.40
codegen_flags: <defaults>
</compile_context>

<pallas_src>
import functools

import jax
import jax.numpy as jnp
from jax.experimental import pallas as pl
from jax.experimental.pallas import tpu as pltpu

_LN_EPS = 1e-5          # torch.nn.LayerNorm default
_LANE = 128
_MIN_GRID_STEPS = 8     # keep >= 8 row tiles when possible (v7x 2-TC sharding)


def _round_up(n, m):
    return ((n + m - 1) // m) * m


def _cdiv(a, b):
    return (a + b - 1) // b


def model_dims(n_stations, out_dim, lat_dims, layers):
    """Feature widths of every linear layer: [in, lat, hidden..., out]."""
    dims = [n_stations * 3, lat_dims]
    lat = lat_dims
    for _ in range(layers):
        lat = max(int(lat // 2), out_dim)
        dims.append(lat)
    dims.append(out_dim)
    return tuple(dims)


# ----------------------------------------------------------------------------
# Kernel
# ----------------------------------------------------------------------------
def _fused_layernorm(h, gamma, beta, inv_d):
    """One-pass LayerNorm over the *real* width D (= 1/inv_d).

    Padded lanes of `h` are exactly zero, so summing over the full padded width
    equals summing over the real D lanes; we just scale by the precomputed 1/D.
    gamma/beta are zero in padded lanes, so padded lanes come out exactly zero.
    """
    s1 = jnp.sum(h, axis=-1, keepdims=True)
    s2 = jnp.sum(h * h, axis=-1, keepdims=True)
    mu = s1 * inv_d
    var = s2 * inv_d - mu * mu          # biased variance, like torch
    inv = jax.lax.rsqrt(var + _LN_EPS)
    return (h - mu) * inv * gamma + beta


def _make_mlp_kernel(ln_inv_d, num_linear, in_dim, out_dim,
                     fold_first_bias, compute_dtype):
    """Fused MLP kernel.  ln_inv_d: tuple of 1/D for each LayerNorm (static)."""

    def kernel(x_ref, w_ref, v_ref, o_ref, pad_ref):
        tile, P = pad_ref.shape

        # --- lane-pad the narrow input block to P lanes inside VMEM ----------
        if fold_first_bias:
            # lane `in_dim` carries a constant 1.0 so that w_all[0] row `in_dim`
            # (which holds the first-layer bias) applies the bias via the MXU.
            col = jax.lax.broadcasted_iota(jnp.int32, (tile, P), 1)
            pad_ref[...] = jnp.where(col == in_dim, 1.0, 0.0).astype(pad_ref.dtype)
        else:
            pad_ref[...] = jnp.zeros_like(pad_ref)
        pad_ref[:, :in_dim] = x_ref[...].astype(pad_ref.dtype)
        h = pad_ref[...]                                    # (tile, P) f32

        def matmul(h, l):
            return jnp.dot(h.astype(compute_dtype), w_ref[l],
                           preferred_element_type=jnp.float32)

        # --- first block: Linear -> ReLU -> LayerNorm ------------------------
        vec = v_ref[0]                                      # (8, P): [b, gamma, beta, ...]
        h = matmul(h, 0)
        if not fold_first_bias:
            h = h + vec[0:1, :]
        h = jnp.maximum(h, 0.0)
        h = _fused_layernorm(h, vec[1:2, :], vec[2:3, :], ln_inv_d[0])

        # --- hidden blocks: Linear -> LayerNorm -> ReLU -----------------------
        for l in range(1, num_linear - 1):
            vec = v_ref[l]
            h = matmul(h, l) + vec[0:1, :]
            h = _fused_layernorm(h, vec[1:2, :], vec[2:3, :], ln_inv_d[l])
            h = jnp.maximum(h, 0.0)

        # --- output head: Linear, store only the real out_dim lanes ----------
        vec = v_ref[num_linear - 1]
        h = matmul(h, num_linear - 1) + vec[0:1, :]
        o_ref[...] = h[:, :out_dim].astype(o_ref.dtype)

    return kernel


# ----------------------------------------------------------------------------
# Parameter init (mirrors PermInvariantQNN.initialize_weights) and packing
# ----------------------------------------------------------------------------
def init_params(key, n_stations, out_dim, lat_dims, layers, dtype=jnp.float32):
    """Linear.weight ~ N(0, 0.5), Linear.bias = 0.5; LayerNorm gamma=1, beta=0.
    Weights are stored transposed to (in, out) so the kernel computes h @ W + b."""
    dims = model_dims(n_stations, out_dim, lat_dims, layers)
    keys = jax.random.split(key, len(dims) - 1)
    params = []
    for l in range(len(dims) - 1):
        d_in, d_out = dims[l], dims[l + 1]
        w = (0.5 * jax.random.normal(keys[l], (d_in, d_out), jnp.float32)).astype(dtype)
        b = jnp.full((1, d_out), 0.5, dtype)
        if l < len(dims) - 2:  # followed by a LayerNorm
            params += [w, b, jnp.ones((1, d_out), dtype), jnp.zeros((1, d_out), dtype)]
        else:                  # output head
            params += [w, b]
    return params


def pack_params(params, dims, use_bf16=False):
    """Pack all weights / per-layer vectors into two lane-aligned, zero-padded buffers.

    w_all : (num_linear, P, P)  weights (zero-padded); row `in_dim` of layer 0 holds the
            first-layer bias (folded, see kernel).  dtype f32 or bf16 (MXU operands).
    v_all : (num_linear, 8, P)  rows [bias, gamma, beta, 0...] per linear layer (f32).
    """
    num_linear = len(dims) - 1
    P = _round_up(max(dims), _LANE)
    in_dim = dims[0]
    fold_first_bias = in_dim < P
    w_all = jnp.zeros((num_linear, P, P), jnp.float32)
    v_all = jnp.zeros((num_linear, 8, P), jnp.float32)
    idx = 0
    for l in range(num_linear):
        d_in, d_out = dims[l], dims[l + 1]
        if l < num_linear - 1:
            w, b, g, be = params[idx:idx + 4]
            idx += 4
        else:
            w, b = params[idx:idx + 2]
            idx += 2
            g = be = None
        w_all = w_all.at[l, :d_in, :d_out].set(w.astype(jnp.float32))
        if l == 0 and fold_first_bias:
            w_all = w_all.at[0, in_dim, :d_out].set(b.reshape(-1).astype(jnp.float32))
        else:
            v_all = v_all.at[l, 0, :d_out].set(b.reshape(-1).astype(jnp.float32))
        if g is not None:
            v_all = v_all.at[l, 1, :d_out].set(g.reshape(-1).astype(jnp.float32))
            v_all = v_all.at[l, 2, :d_out].set(be.reshape(-1).astype(jnp.float32))
    if use_bf16:
        w_all = w_all.astype(jnp.bfloat16)
    return w_all, v_all


# ----------------------------------------------------------------------------
# Forward
# ----------------------------------------------------------------------------
@functools.partial(jax.jit, static_argnames=("dims", "tile_n"))
def perm_invariant_qnn_forward(x, w_all, v_all, *, dims, tile_n=1024):
    """x: (n_users, n_stations*3) -> (n_users, out_dim), fully inside one pallas_call."""
    n_users = x.shape[0]
    in_dim, out_dim = dims[0], dims[-1]
    num_linear = len(dims) - 1
    P = w_all.shape[-1]
    compute_dtype = w_all.dtype            # f32 (exact) or bf16 (fast MXU path)
    fold_first_bias = in_dim < P           # must match pack_params

    # Row tile: multiple of 8 (f32 sublane), capped by tile_n, by the row count,
    # and so that the grid keeps >= _MIN_GRID_STEPS steps (v7x 2-TC sharding).
    n_rows8 = _round_up(max(n_users, 1), 8)
    tile = min(_round_up(tile_n, 8), n_rows8)
    cap = _round_up(_cdiv(n_rows8, _MIN_GRID_STEPS), 8)
    tile = max(8, min(tile, cap))
    n_pad = _round_up(n_users, tile)

    # Only pad rows (cheap, natural lane width); lane padding happens in-kernel.
    x = x.astype(jnp.float32)
    if n_pad != n_users:
        x = jnp.pad(x, ((0, n_pad - n_users), (0, 0)))

    ln_inv_d = tuple(1.0 / float(d) for d in dims[1:-1])
    kernel = _make_mlp_kernel(ln_inv_d, num_linear, in_dim, out_dim,
                              fold_first_bias, compute_dtype)

    out = pl.pallas_call(
        kernel,
        out_shape=jax.ShapeDtypeStruct((n_pad, out_dim), jnp.float32),
        grid=(n_pad // tile,),
        in_specs=[
            pl.BlockSpec((tile, in_dim), lambda i: (i, 0)),          # user tile (narrow)
            pl.BlockSpec((num_linear, P, P), lambda i: (0, 0, 0)),   # weights, resident
            pl.BlockSpec((num_linear, 8, P), lambda i: (0, 0, 0)),   # b/gamma/beta, resident
        ],
        out_specs=pl.BlockSpec((tile, out_dim), lambda i: (i, 0)),   # narrow output
        scratch_shapes=[pltpu.VMEM((tile, P), jnp.float32)],         # lane-padded input
        compiler_params=pltpu.CompilerParams(
            dimension_semantics=("parallel",),   # v7x: shard row tiles across both TCs
            vmem_limit_bytes=32 << 20,           # comfortable on v7x's 64 MiB physical VMEM
        ),
    )(x, w_all, v_all)

    return out[:n_users]


# ----------------------------------------------------------------------------
# Plain-JAX reference (matches torch op ordering / two-pass LayerNorm)
# ----------------------------------------------------------------------------
def _ref_layernorm(h, gamma, beta):
    mu = jnp.mean(h, axis=-1, keepdims=True)
    var = jnp.mean((h - mu) * (h - mu), axis=-1, keepdims=True)
    return (h - mu) * jax.lax.rsqrt(var + _LN_EPS) * gamma + beta


def _reference_forward(x, params, layers):
    h = x.astype(jnp.float32)
    idx = 0
    for blk in range(layers + 1):
        w, b, g, be = params[idx:idx + 4]
        idx += 4
        h = h @ w + b
        if blk == 0:
            h = jnp.maximum(h, 0.0)
            h = _ref_layernorm(h, g, be)
        else:
            h = _ref_layernorm(h, g, be)
            h = jnp.maximum(h, 0.0)
    w, b = params[idx:idx + 2]
    return h @ w + b


# ----------------------------------------------------------------------------
if __name__ == "__main__":
    key = jax.random.PRNGKey(0)

    # Small shapes matching the module.
    n_users, n_stations, out_dim, lat_dims, layers = 8, 4, 4, 32, 2
    dims = model_dims(n_stations, out_dim, lat_dims, layers)   # (12, 32, 16, 8, 4)

    k_x, k_p, k_x2 = jax.random.split(key, 3)
    x = jax.random.normal(k_x, (n_users, n_stations * 3), dtype=jnp.float32)
    params = init_params(k_p, n_stations, out_dim, lat_dims, layers)

    # --- test 1: f32 weights, single-tile grid -------------------------------
    w_all, v_all = pack_params(params, dims)
    out = perm_invariant_qnn_forward(x, w_all, v_all, dims=dims)
    out = jax.block_until_ready(out)
    ref = _reference_forward(x, params, layers)
    assert out.shape == (n_users, out_dim)
    assert jnp.allclose(out, ref, atol=1e-4, rtol=1e-4), "mismatch vs reference (test 1)"

    # --- test 2: multi-step grid, row padding, narrow in/out DMAs ------------
    n_users2 = 300
    x2 = jax.random.normal(k_x2, (n_users2, n_stations * 3), dtype=jnp.float32)
    out2 = perm_invariant_qnn_forward(x2, w_all, v_all, dims=dims, tile_n=128)
    out2 = jax.block_until_ready(out2)
    ref2 = _reference_forward(x2, params, layers)
    assert out2.shape == (n_users2, out_dim)
    assert jnp.allclose(out2, ref2, atol=1e-4, rtol=1e-4), "mismatch vs reference (test 2)"

    # --- test 3: bf16 MXU operands (fast path), relaxed tolerance ------------
    w_bf16, v_f32 = pack_params(params, dims, use_bf16=True)
    out3 = perm_invariant_qnn_forward(x2, w_bf16, v_f32, dims=dims, tile_n=1024)
    out3 = jax.block_until_ready(out3)
    assert out3.shape == (n_users2, out_dim)
    assert jnp.allclose(out3, ref2, atol=5e-2, rtol=5e-2), "mismatch vs reference (test 3, bf16)"

    print("KERNEL_OK")
</pallas_src>

<mosaic_0001>
module attributes {stable_mosaic.version = 11 : i64} {
  func.func @kernel(%arg0: i32, %arg1: memref<8x12xf32, #tpu.memory_space<vmem>>, %arg2: memref<4x128x128xf32, #tpu.memory_space<vmem>>, %arg3: memref<4x8x128xf32, #tpu.memory_space<vmem>>, %arg4: memref<8x4xf32, #tpu.memory_space<vmem>>, %arg5: memref<8x128xf32, #tpu.memory_space<vmem>>) attributes {dimension_semantics = [#tpu.dimension_semantics<parallel>], iteration_bounds = array<i64: 1>, scalar_prefetch = 0 : i64, scratch_operands = 1 : i64, tpu.core_type = #tpu.core_type<tc>, window_params = [{transform_indices = @transform_0, window_bounds = array<i64: 8, 12>}, {pipeline_mode = #tpu.pipeline_mode<synchronous>, transform_indices = @transform_1, window_bounds = array<i64: 4, 128, 128>}, {pipeline_mode = #tpu.pipeline_mode<synchronous>, transform_indices = @transform_2, window_bounds = array<i64: 4, 8, 128>}, {transform_indices = @transform_3, window_bounds = array<i64: 8, 4>}]} {
    %0 = tpu.iota {dimensions = array<i32: 1>} : vector<8x128xi32>
    %c12_i32 = arith.constant 12 : i32
    %1 = vector.broadcast %c12_i32 : i32 to vector<8x128xi32>
    %2 = arith.cmpi eq, %0, %1 : vector<8x128xi32>
    %cst = arith.constant 1.000000e+00 : f32
    %cst_0 = arith.constant 0.000000e+00 : f32
    %3 = vector.broadcast %cst : f32 to vector<8x128xf32>
    %4 = vector.broadcast %cst_0 : f32 to vector<8x128xf32>
    %5 = arith.select %2, %3, %4 : vector<8x128xi1>, vector<8x128xf32>
    %c0 = arith.constant 0 : index
    %c0_1 = arith.constant 0 : index
    %6 = vector.load %arg5[%c0, %c0_1] : memref<8x128xf32, #tpu.memory_space<vmem>>, vector<8x128xf32>
    tpu.vector_store %arg5[%c0, %c0_1], %5 {strides = array<i32>} : memref<8x128xf32, #tpu.memory_space<vmem>>, vector<8x128xf32>,
    %c0_2 = arith.constant 0 : index
    %c0_3 = arith.constant 0 : index
    %7 = vector.load %arg1[%c0_2, %c0_3] : memref<8x12xf32, #tpu.memory_space<vmem>>, vector<8x12xf32>
    %c0_4 = arith.constant 0 : index
    %c0_5 = arith.constant 0 : index
    %8 = vector.load %arg5[%c0_4, %c0_5] : memref<8x128xf32, #tpu.memory_space<vmem>>, vector<8x12xf32>
    tpu.vector_store %arg5[%c0_4, %c0_5], %7 {strides = array<i32>} : memref<8x128xf32, #tpu.memory_space<vmem>>, vector<8x12xf32>,
    %c0_6 = arith.constant 0 : index
    %c0_7 = arith.constant 0 : index
    %9 = vector.load %arg5[%c0_6, %c0_7] : memref<8x128xf32, #tpu.memory_space<vmem>>, vector<8x128xf32>
    %c0_8 = arith.constant 0 : index
    %c0_9 = arith.constant 0 : index
    %c0_10 = arith.constant 0 : index
    %10 = vector.load %arg3[%c0_8, %c0_9, %c0_10] : memref<4x8x128xf32, #tpu.memory_space<vmem>>, vector<1x8x128xf32>
    %11 = vector.shape_cast %10 : vector<1x8x128xf32> to vector<8x128xf32>
    %c0_11 = arith.constant 0 : index
    %c0_12 = arith.constant 0 : index
    %c0_13 = arith.constant 0 : index
    %12 = vector.load %arg2[%c0_11, %c0_12, %c0_13] : memref<4x128x128xf32, #tpu.memory_space<vmem>>, vector<1x128x128xf32>
    %13 = vector.shape_cast %12 : vector<1x128x128xf32> to vector<128x128xf32>
    %cst_14 = arith.constant dense<0.000000e+00> : vector<8x128xf32>
    %14 = tpu.matmul %9, %13, %cst_14 {dimension_numbers = #tpu.dot_dimension_numbers<[1], [0], [0], [1], [0, 0, 1, 1], [], []>} : vector<8x128xf32>, vector<128x128xf32>, vector<8x128xf32> -> vector<8x128xf32>
    %cst_15 = arith.constant 0.000000e+00 : f32
    %15 = vector.broadcast %cst_15 : f32 to vector<8x128xf32>
    %16 = arith.maximumf %14, %15 : vector<8x128xf32>
    %17 = vector.extract_strided_slice %11 {offsets = [1, 0], sizes = [1, 128], strides = [1, 1]} : vector<8x128xf32> to vector<1x128xf32>
    %18 = vector.extract_strided_slice %11 {offsets = [2, 0], sizes = [1, 128], strides = [1, 1]} : vector<8x128xf32> to vector<1x128xf32>
    %cst_16 = arith.constant dense<0.000000e+00> : vector<8xf32>
    %19 = vector.multi_reduction <add>, %16, %cst_16 [1] : vector<8x128xf32> to vector<8xf32>
    %20 = vector.shape_cast %19 : vector<8xf32> to vector<8x1xf32>
    %21 = arith.mulf %16, %16 : vector<8x128xf32>
    %cst_17 = arith.constant dense<0.000000e+00> : vector<8xf32>
    %22 = vector.multi_reduction <add>, %21, %cst_17 [1] : vector<8x128xf32> to vector<8xf32>
    %23 = vector.shape_cast %22 : vector<8xf32> to vector<8x1xf32>
    %cst_18 = arith.constant 3.125000e-02 : f32
    %24 = vector.broadcast %cst_18 : f32 to vector<8x1xf32>
    %25 = arith.mulf %20, %24 : vector<8x1xf32>
    %cst_19 = arith.constant 3.125000e-02 : f32
    %26 = vector.broadcast %cst_19 : f32 to vector<8x1xf32>
    %27 = arith.mulf %23, %26 : vector<8x1xf32>
    %28 = arith.mulf %25, %25 : vector<8x1xf32>
    %29 = arith.subf %27, %28 : vector<8x1xf32>
    %cst_20 = arith.constant 9.99999974E-6 : f32
    %30 = vector.broadcast %cst_20 : f32 to vector<8x1xf32>
    %31 = arith.addf %29, %30 : vector<8x1xf32>
    %32 = math.rsqrt %31 : vector<8x1xf32>
    %33 = vector.broadcast %25 : vector<8x1xf32> to vector<8x128xf32>
    %34 = arith.subf %16, %33 : vector<8x128xf32>
    %35 = vector.broadcast %32 : vector<8x1xf32> to vector<8x128xf32>
    %36 = arith.mulf %34, %35 : vector<8x128xf32>
    %37 = vector.broadcast %17 : vector<1x128xf32> to vector<8x128xf32>
    %38 = arith.mulf %36, %37 : vector<8x128xf32>
    %39 = vector.broadcast %18 : vector<1x128xf32> to vector<8x128xf32>
    %40 = arith.addf %38, %39 : vector<8x128xf32>
    %c1 = arith.constant 1 : index
    %c0_21 = arith.constant 0 : index
    %c0_22 = arith.constant 0 : index
    %41 = vector.load %arg3[%c1, %c0_21, %c0_22] : memref<4x8x128xf32, #tpu.memory_space<vmem>>, vector<1x8x128xf32>
    %42 = vector.shape_cast %41 : vector<1x8x128xf32> to vector<8x128xf32>
    %c1_23 = arith.constant 1 : index
    %c0_24 = arith.constant 0 : index
    %c0_25 = arith.constant 0 : index
    %43 = vector.load %arg2[%c1_23, %c0_24, %c0_25] : memref<4x128x128xf32, #tpu.memory_space<vmem>>, vector<1x128x128xf32>
    %44 = vector.shape_cast %43 : vector<1x128x128xf32> to vector<128x128xf32>
    %cst_26 = arith.constant dense<0.000000e+00> : vector<8x128xf32>
    %45 = tpu.matmul %40, %44, %cst_26 {dimension_numbers = #tpu.dot_dimension_numbers<[1], [0], [0], [1], [0, 0, 1, 1], [], []>} : vector<8x128xf32>, vector<128x128xf32>, vector<8x128xf32> -> vector<8x128xf32>
    %46 = vector.extract_strided_slice %42 {offsets = [0, 0], sizes = [1, 128], strides = [1, 1]} : vector<8x128xf32> to vector<1x128xf32>
    %47 = vector.broadcast %46 : vector<1x128xf32> to vector<8x128xf32>
    %48 = arith.addf %45, %47 : vector<8x128xf32>
    %49 = vector.extract_strided_slice %42 {offsets = [1, 0], sizes = [1, 128], strides = [1, 1]} : vector<8x128xf32> to vector<1x128xf32>
    %50 = vector.extract_strided_slice %42 {offsets = [2, 0], sizes = [1, 128], strides = [1, 1]} : vector<8x128xf32> to vector<1x128xf32>
    %cst_27 = arith.constant dense<0.000000e+00> : vector<8xf32>
    %51 = vector.multi_reduction <add>, %48, %cst_27 [1] : vector<8x128xf32> to vector<8xf32>
    %52 = vector.shape_cast %51 : vector<8xf32> to vector<8x1xf32>
    %53 = arith.mulf %48, %48 : vector<8x128xf32>
    %cst_28 = arith.constant dense<0.000000e+00> : vector<8xf32>
    %54 = vector.multi_reduction <add>, %53, %cst_28 [1] : vector<8x128xf32> to vector<8xf32>
    %55 = vector.shape_cast %54 : vector<8xf32> to vector<8x1xf32>
    %cst_29 = arith.constant 6.250000e-02 : f32
    %56 = vector.broadcast %cst_29 : f32 to vector<8x1xf32>
    %57 = arith.mulf %52, %56 : vector<8x1xf32>
    %cst_30 = arith.constant 6.250000e-02 : f32
    %58 = vector.broadcast %cst_30 : f32 to vector<8x1xf32>
    %59 = arith.mulf %55, %58 : vector<8x1xf32>
    %60 = arith.mulf %57, %57 : vector<8x1xf32>
    %61 = arith.subf %59, %60 : vector<8x1xf32>
    %cst_31 = arith.constant 9.99999974E-6 : f32
    %62 = vector.broadcast %cst_31 : f32 to vector<8x1xf32>
    %63 = arith.addf %61, %62 : vector<8x1xf32>
    %64 = math.rsqrt %63 : vector<8x1xf32>
    %65 = vector.broadcast %57 : vector<8x1xf32> to vector<8x128xf32>
    %66 = arith.subf %48, %65 : vector<8x128xf32>
    %67 = vector.broadcast %64 : vector<8x1xf32> to vector<8x128xf32>
    %68 = arith.mulf %66, %67 : vector<8x128xf32>
    %69 = vector.broadcast %49 : vector<1x128xf32> to vector<8x128xf32>
    %70 = arith.mulf %68, %69 : vector<8x128xf32>
    %71 = vector.broadcast %50 : vector<1x128xf32> to vector<8x128xf32>
    %72 = arith.addf %70, %71 : vector<8x128xf32>
    %cst_32 = arith.constant 0.000000e+00 : f32
    %73 = vector.broadcast %cst_32 : f32 to vector<8x128xf32>
    %74 = arith.maximumf %72, %73 : vector<8x128xf32>
    %c2 = arith.constant 2 : index
    %c0_33 = arith.constant 0 : index
    %c0_34 = arith.constant 0 : index
    %75 = vector.load %arg3[%c2, %c0_33, %c0_34] : memref<4x8x128xf32, #tpu.memory_space<vmem>>, vector<1x8x128xf32>
    %76 = vector.shape_cast %75 : vector<1x8x128xf32> to vector<8x128xf32>
    %c2_35 = arith.constant 2 : index
    %c0_36 = arith.constant 0 : index
    %c0_37 = arith.constant 0 : index
    %77 = vector.load %arg2[%c2_35, %c0_36, %c0_37] : memref<4x128x128xf32, #tpu.memory_space<vmem>>, vector<1x128x128xf32>
    %78 = vector.shape_cast %77 : vector<1x128x128xf32> to vector<128x128xf32>
    %cst_38 = arith.constant dense<0.000000e+00> : vector<8x128xf32>
    %79 = tpu.matmul %74, %78, %cst_38 {dimension_numbers = #tpu.dot_dimension_numbers<[1], [0], [0], [1], [0, 0, 1, 1], [], []>} : vector<8x128xf32>, vector<128x128xf32>, vector<8x128xf32> -> vector<8x128xf32>
    %80 = vector.extract_strided_slice %76 {offsets = [0, 0], sizes = [1, 128], strides = [1, 1]} : vector<8x128xf32> to vector<1x128xf32>
    %81 = vector.broadcast %80 : vector<1x128xf32> to vector<8x128xf32>
    %82 = arith.addf %79, %81 : vector<8x128xf32>
    %83 = vector.extract_strided_slice %76 {offsets = [1, 0], sizes = [1, 128], strides = [1, 1]} : vector<8x128xf32> to vector<1x128xf32>
    %84 = vector.extract_strided_slice %76 {offsets = [2, 0], sizes = [1, 128], strides = [1, 1]} : vector<8x128xf32> to vector<1x128xf32>
    %cst_39 = arith.constant dense<0.000000e+00> : vector<8xf32>
    %85 = vector.multi_reduction <add>, %82, %cst_39 [1] : vector<8x128xf32> to vector<8xf32>
    %86 = vector.shape_cast %85 : vector<8xf32> to vector<8x1xf32>
    %87 = arith.mulf %82, %82 : vector<8x128xf32>
    %cst_40 = arith.constant dense<0.000000e+00> : vector<8xf32>
    %88 = vector.multi_reduction <add>, %87, %cst_40 [1] : vector<8x128xf32> to vector<8xf32>
    %89 = vector.shape_cast %88 : vector<8xf32> to vector<8x1xf32>
    %cst_41 = arith.constant 1.250000e-01 : f32
    %90 = vector.broadcast %cst_41 : f32 to vector<8x1xf32>
    %91 = arith.mulf %86, %90 : vector<8x1xf32>
    %cst_42 = arith.constant 1.250000e-01 : f32
    %92 = vector.broadcast %cst_42 : f32 to vector<8x1xf32>
    %93 = arith.mulf %89, %92 : vector<8x1xf32>
    %94 = arith.mulf %91, %91 : vector<8x1xf32>
    %95 = arith.subf %93, %94 : vector<8x1xf32>
    %cst_43 = arith.constant 9.99999974E-6 : f32
    %96 = vector.broadcast %cst_43 : f32 to vector<8x1xf32>
    %97 = arith.addf %95, %96 : vector<8x1xf32>
    %98 = math.rsqrt %97 : vector<8x1xf32>
    %99 = vector.broadcast %91 : vector<8x1xf32> to vector<8x128xf32>
    %100 = arith.subf %82, %99 : vector<8x128xf32>
    %101 = vector.broadcast %98 : vector<8x1xf32> to vector<8x128xf32>
    %102 = arith.mulf %100, %101 : vector<8x128xf32>
    %103 = vector.broadcast %83 : vector<1x128xf32> to vector<8x128xf32>
    %104 = arith.mulf %102, %103 : vector<8x128xf32>
    %105 = vector.broadcast %84 : vector<1x128xf32> to vector<8x128xf32>
    %106 = arith.addf %104, %105 : vector<8x128xf32>
    %cst_44 = arith.constant 0.000000e+00 : f32
    %107 = vector.broadcast %cst_44 : f32 to vector<8x128xf32>
    %108 = arith.maximumf %106, %107 : vector<8x128xf32>
    %c3 = arith.constant 3 : index
    %c0_45 = arith.constant 0 : index
    %c0_46 = arith.constant 0 : index
    %109 = vector.load %arg3[%c3, %c0_45, %c0_46] : memref<4x8x128xf32, #tpu.memory_space<vmem>>, vector<1x8x128xf32>
    %110 = vector.shape_cast %109 : vector<1x8x128xf32> to vector<8x128xf32>
    %c3_47 = arith.constant 3 : index
    %c0_48 = arith.constant 0 : index
    %c0_49 = arith.constant 0 : index
    %111 = vector.load %arg2[%c3_47, %c0_48, %c0_49] : memref<4x128x128xf32, #tpu.memory_space<vmem>>, vector<1x128x128xf32>
    %112 = vector.shape_cast %111 : vector<1x128x128xf32> to vector<128x128xf32>
    %cst_50 = arith.constant dense<0.000000e+00> : vector<8x128xf32>
    %113 = tpu.matmul %108, %112, %cst_50 {dimension_numbers = #tpu.dot_dimension_numbers<[1], [0], [0], [1], [0, 0, 1, 1], [], []>} : vector<8x128xf32>, vector<128x128xf32>, vector<8x128xf32> -> vector<8x128xf32>
    %114 = vector.extract_strided_slice %110 {offsets = [0, 0], sizes = [1, 128], strides = [1, 1]} : vector<8x128xf32> to vector<1x128xf32>
    %115 = vector.broadcast %114 : vector<1x128xf32> to vector<8x128xf32>
    %116 = arith.addf %113, %115 : vector<8x128xf32>
    %117 = vector.extract_strided_slice %116 {offsets = [0, 0], sizes = [8, 4], strides = [1, 1]} : vector<8x128xf32> to vector<8x4xf32>
    %c0_51 = arith.constant 0 : index
    %c0_52 = arith.constant 0 : index
    %118 = vector.load %arg4[%c0_51, %c0_52] : memref<8x4xf32, #tpu.memory_space<vmem>>, vector<8x4xf32>
    tpu.vector_store %arg4[%c0_51, %c0_52], %117 {strides = array<i32>} : memref<8x4xf32, #tpu.memory_space<vmem>>, vector<8x4xf32>,
    return
  }
  func.func @transform_0(%arg0: i32) -> (i32, i32) {
    %c0_i32 = arith.constant 0 : i32
    %c0_i32_0 = arith.constant 0 : i32
    return %arg0, %c0_i32 : i32, i32
  }
  func.func @transform_1(%arg0: i32) -> (i32, i32, i32) {
    %c0_i32 = arith.constant 0 : i32
    %c0_i32_0 = arith.constant 0 : i32
    %c0_i32_1 = arith.constant 0 : i32
    %c0_i32_2 = arith.constant 0 : i32
    return %c0_i32, %c0_i32_0, %c0_i32_1 : i32, i32, i32
  }
  func.func @transform_2(%arg0: i32) -> (i32, i32, i32) {
    %c0_i32 = arith.constant 0 : i32
    %c0_i32_0 = arith.constant 0 : i32
    %c0_i32_1 = arith.constant 0 : i32
    %c0_i32_2 = arith.constant 0 : i32
    return %c0_i32, %c0_i32_0, %c0_i32_1 : i32, i32, i32
  }
  func.func @transform_3(%arg0: i32) -> (i32, i32) {
    %c0_i32 = arith.constant 0 : i32
    %c0_i32_0 = arith.constant 0 : i32
    return %arg0, %c0_i32 : i32, i32
  }
}

</mosaic_0001>

<bundles_post_ra>
// kernel: perm_invariant_qnn_forward.1
= control target key start
LH: loop header
LB: loop body
LE: loop exit
PB: predicated region body
PF: predicated region fallthrough
CT: control target
= control target key end

     0   :  { %8 = vsyncpa [#allocation4], 0  ;;  %s944_s0 = inlined_call_operand.hbm [shape: f32[8,12], index: 0, kind: input, shape index: {}]   ;;  %s945_s1 = inlined_call_operand.hbm [shape: f32[4,128,128], index: 1, kind: input, shape index: {}]   ;;  %s946_s2 = inlined_call_operand.hbm [shape: f32[4,8,128], index: 2, kind: input, shape index: {}]   ;;  %s947_s3 = inlined_call_operand.vmem [shape: f32[8,4], index: 3, kind: output, shape index: {}]  }
   0x1   :  { %9 = vsyncpa [#allocation6], 0  ;;  %s793_s12 = smov [#allocation5]  }
   0x2   :  { %s25_s13 = sshll.u32 %s793_s12, 4  ;;  %s26_s13 = int_to_ptr.vmem [resolvable:$true] %s25_s13 }
   0x3   :  { %s737_s14 = scalar_lea.vmem %s26_s13, 8192  ;;  %p742_p1 = scmp.lt.s32.totalorder %s26_s13, %s26_s13 }
   0x4   :  { %p738_p0 = scmp.ne.s32.totalorder %s26_s13, %s737_s14  ;;  %p743_p2 = scmp.lt.s32.totalorder %s737_s14, %s737_s14 }
   0x6   :  { %p744_p3 = por %p743_p2, %p742_p1 }
   0x8   :  { %p745_p4 = pnand %p744_p3, %p738_p0 }
   0xa   :  { %748 = shalt.err (!%p745_p4)
}
   0xb   :  { %s794_s15 = smov 128   ;;  %s795_s16 = smov 8  }
   0xc   :  { %31 = dma.hbm_to_vmem [thread:$0]  %s945_s1, 8192, %s26_s13, [#allocation6], %s794_s15, %s794_s15, %s795_s16  }
   0xd   :  { %s796_s19 = smov [#allocation3]   ;;  %s797_s21 = smov [#allocation7]  }
   0xe   :  { %s16_s20 = sshll.u32 %s796_s19, 4  ;;  %s37_s22 = sshll.u32 %s797_s21, 4  ;;  %s17_s20 = int_to_ptr.vmem [resolvable:$true] %s16_s20  ;;  %s38_s22 = int_to_ptr.vmem [resolvable:$true] %s37_s22 }
   0xf   :  { %s757_s23 = scalar_lea.vmem %s17_s20, 128  ;;  %p762_p6 = scmp.lt.s32.totalorder %s17_s20, %s17_s20 }
  0x10   :  { %p758_p5 = scmp.ne.s32.totalorder %s17_s20, %s757_s23  ;;  %p763_p7 = scmp.lt.s32.totalorder %s757_s23, %s757_s23 }
  0x12   :  { %p764_p8 = por %p763_p7, %p762_p6 }
  0x14   :  { %p765_p9 = pnand %p764_p8, %p758_p5 }
  0x16   :  { %768 = shalt.err (!%p765_p9)
}
  0x17   :  { %19 = dma.hbm_to_vmem [thread:$0]  %s944_s0, 128, %s17_s20, [#allocation4]  }
  0x18   :  { %s777_s26 = scalar_lea.vmem %s38_s22, 512  ;;  %p782_p11 = scmp.lt.s32.totalorder %s38_s22, %s38_s22 }
  0x19   :  { %p778_p10 = scmp.ne.s32.totalorder %s38_s22, %s777_s26  ;;  %p783_p12 = scmp.lt.s32.totalorder %s777_s26, %s777_s26 }
  0x1b   :  { %p784_p13 = por %p783_p12, %p782_p11 }
  0x1d   :  { %p785_p0 = pnand %p784_p13, %p778_p10 }
  0x1f   :  { %788 = shalt.err (!%p785_p0)
}
  0x20   :  { %43 = dma.hbm_to_vmem [thread:$0]  %s946_s2, 512, %s38_s22, [#allocation6], %s794_s15, %s794_s15, %s795_s16  }
  0x21   :  { %789 = dma.done.wait [#allocation4], 128  }
  0x22   :  { %790 = vsyncadd [#allocation4], 4294967168 }
  0x23   :  { %791 = dma.done.wait [#allocation6], 8704  }
  0x24   :  { %792 = vsyncadd [#allocation6], 4294958592  ;;  %v53_v0 = vlaneseq  ;;  %v798_v1 = vmov 0.0   ;;  %vm799_vm0 = vmmov 0   ;;  %v78_v4 = vld [vmem:[#allocation5 + $0x78] sm:$0xff]  ;;  %v77_v5 = vld [vmem:[#allocation5 + $0x70] sm:$0xff] }
  0x25   :  { %576 = vmatprep.subr.mxu0 %v798_v1  ;;  %608 = vmatprep.mubr.msk.f32.mxu0 %vm799_vm0, %v798_v1  ;;  %v76_v6 = vld [vmem:[#allocation5 + $0x68] sm:$0xff]  ;;  %vm59_vm2 = vcmask 97280   ;;  %v75_v7 = vld [vmem:[#allocation5 + $0x60] sm:$0xff]  ;;  %v58_v8 = vld [vmem:[#allocation3] sm:$0xff]  ;;  %vm500_vm3 = vcmask 31744  }
  0x26   :  { %v54_v2 = vand.u32 127, %v53_v0  ;;  %611 = vmatprep.subr.mxu1 %v798_v1  ;;  %643 = vmatprep.mubr.msk.f32.mxu1 %vm799_vm0, %v798_v1  ;;  %v74_v9 = vld [vmem:[#allocation5 + $0x58] sm:$0xff]  ;;  %v73_v10 = vld [vmem:[#allocation5 + $0x50] sm:$0xff]  ;;  %v72_v11 = vld [vmem:[#allocation5 + $0x48] sm:$0xff]  ;;  %v164_v49 = vshrl.u32 %v53_v0, 7 }
  0x27   :  { %577 = vmatpush3.msra.mxu0 %v78_v4  ;;  %v71_v12 = vld [vmem:[#allocation5 + $0x40] sm:$0xff]  ;;  %v70_v13 = vld [vmem:[#allocation5 + $0x38] sm:$0xff]  ;;  %v69_v14 = vld [vmem:[#allocation5 + $0x30] sm:$0xff] }
  0x28   :  { %vm55_vm1 = vcmp.eq.s32.totalorder %v54_v2, 12  ;;  %578 = vmatprep.subr.mxu0 %v798_v1  ;;  %v68_v15 = vld [vmem:[#allocation5 + $0x28] sm:$0xff]  ;;  %v67_v16 = vld [vmem:[#allocation5 + $0x20] sm:$0xff]  ;;  %v66_v17 = vld [vmem:[#allocation5 + $0x18] sm:$0xff]  ;;  %v877_v50 = vsub.s32 1, %v164_v49  ;;  %v879_v52 = vsub.s32 2, %v164_v49 }
  0x29   :  { %v56_v3 = vsel %vm55_vm1, 1.0, %v798_v1  ;;  %579 = vmatpush3.msra.mxu0 %v77_v5  ;;  %v65_v18 = vld [vmem:[#allocation5 + $0x10] sm:$0xff]  ;;  %v64_v19 = vld [vmem:[#allocation5 + $0x8] sm:$0xff]  ;;  %v63_v20 = vld [vmem:[#allocation5] sm:$0xff]  ;;  %v886_v60 = vsub.s32 0, %v164_v49 }
  0x2a   :  { %57 = vst [vmem:[#allocation2] sm:$0xff] %v56_v3  ;;  %580 = vmatprep.subr.mxu0 %v798_v1  ;;  %v191_v22 = vld [vmem:[#allocation5 + $0xf8] sm:$0xff]  ;;  %v190_v27 = vld [vmem:[#allocation5 + $0xf0] sm:$0xff]  ;;  %v189_v28 = vld [vmem:[#allocation5 + $0xe8] sm:$0xff] }
  0x2b   :  { %581 = vmatpush3.msra.mxu0 %v76_v6  ;;  %60 = vst.msk [vmem:[#allocation2] sm:$0xff] %vm59_vm2, %v58_v8  ;;  %612 = vmatpush3.msra.mxu1 %v191_v22  ;;  %v188_v29 = vld [vmem:[#allocation5 + $0xe0] sm:$0xff]  ;;  %v187_v30 = vld [vmem:[#allocation5 + $0xd8] sm:$0xff]  ;;  %v186_v31 = vld [vmem:[#allocation5 + $0xd0] sm:$0xff] }
  0x2c   :  { %582 = vmatprep.subr.mxu0 %v798_v1  ;;  %613 = vmatprep.subr.mxu1 %v798_v1  ;;  %v185_v32 = vld [vmem:[#allocation5 + $0xc8] sm:$0xff]  ;;  %v184_v33 = vld [vmem:[#allocation5 + $0xc0] sm:$0xff]  ;;  %v183_v34 = vld [vmem:[#allocation5 + $0xb8] sm:$0xff] }
  0x2d   :  { %583 = vmatpush3.msra.mxu0 %v75_v7  ;;  %614 = vmatpush3.msra.mxu1 %v190_v27  ;;  %v182_v35 = vld [vmem:[#allocation5 + $0xb0] sm:$0xff]  ;;  %v181_v36 = vld [vmem:[#allocation5 + $0xa8] sm:$0xff]  ;;  %v180_v37 = vld [vmem:[#allocation5 + $0xa0] sm:$0xff] }
  0x2e   :  { %584 = vmatprep.subr.mxu0 %v798_v1  ;;  %615 = vmatprep.subr.mxu1 %v798_v1  ;;  %v179_v38 = vld [vmem:[#allocation5 + $0x98] sm:$0xff]  ;;  %v178_v39 = vld [vmem:[#allocation5 + $0x90] sm:$0xff]  ;;  %v177_v40 = vld [vmem:[#allocation5 + $0x88] sm:$0xff] }
  0x2f   :  { %585 = vmatpush3.msra.mxu0 %v74_v9  ;;  %616 = vmatpush3.msra.mxu1 %v189_v28  ;;  %v176_v41 = vld [vmem:[#allocation5 + $0x80] sm:$0xff]  ;;  %v888_v61 = vld [vmem:[#allocation7 + $0x8] sm:$0xff]  ;;  %v308_v4 = vld [vmem:[#allocation5 + $0x178] sm:$0xff] }
  0x30   :  { %586 = vmatprep.subr.mxu0 %v798_v1  ;;  %617 = vmatprep.subr.mxu1 %v798_v1  ;;  %v62_v51 = vld [vmem:[#allocation7] sm:$0xff]  ;;  %v195_v62 = vrot.slane %v888_v61, %v886_v60  ;;  %v307_v5 = vld [vmem:[#allocation5 + $0x170] sm:$0xff]  ;;  %v306_v6 = vld [vmem:[#allocation5 + $0x168] sm:$0xff]  ;;  %v282_v27 = vrot.slane %v888_v61, %v877_v50 }
  0x31   :  { %587 = vmatpush3.msra.mxu0 %v73_v10  ;;  %618 = vmatpush3.msra.mxu1 %v188_v29  ;;  %v166_v54 = vrot.slane %v62_v51, %v877_v50  ;;  %v171_v57 = vrot.slane %v62_v51, %v879_v52  ;;  %v305_v7 = vld [vmem:[#allocation5 + $0x160] sm:$0xff]  ;;  %v304_v8 = vld [vmem:[#allocation5 + $0x158] sm:$0xff]  ;;  %v303_v9 = vld [vmem:[#allocation5 + $0x150] sm:$0xff] }
  0x32   :  { %588 = vmatprep.subr.mxu0 %v798_v1  ;;  %v61_v21 = vld [vmem:[#allocation2] sm:$0xff]  ;;  %619 = vmatprep.subr.mxu1 %v798_v1  ;;  %v302_v10 = vld [vmem:[#allocation5 + $0x148] sm:$0xff]  ;;  %v417_v49 = vld [vmem:[#allocation5 + $0x1b8] sm:$0xff] }
  0x33   :  { %589 = vmatpush3.msra.mxu0 %v72_v11  ;;  %620 = vmatpush3.msra.mxu1 %v187_v30  ;;  %v301_v11 = vld [vmem:[#allocation5 + $0x140] sm:$0xff]  ;;  %v287_v30 = vrot.slane %v888_v61, %v879_v52  ;;  %v416_v51 = vld [vmem:[#allocation5 + $0x1b0] sm:$0xff] }
  0x34   :  { %590 = vmatprep.subr.mxu0 %v798_v1  ;;  %621 = vmatprep.subr.mxu1 %v798_v1 }
  0x35   :  { %591 = vmatpush3.msra.mxu0 %v71_v12  ;;  %622 = vmatpush3.msra.mxu1 %v186_v31  ;;  %v300_v12 = vld [vmem:[#allocation5 + $0x138] sm:$0xff] }
  0x36   :  { %592 = vmatprep.subr.mxu0 %v798_v1  ;;  %623 = vmatprep.subr.mxu1 %v798_v1 }
  0x37   :  { %593 = vmatpush3.msra.mxu0 %v70_v13  ;;  %624 = vmatpush3.msra.mxu1 %v185_v32  ;;  %v299_v13 = vld [vmem:[#allocation5 + $0x130] sm:$0xff] }
  0x38   :  { %594 = vmatprep.subr.mxu0 %v798_v1  ;;  %625 = vmatprep.subr.mxu1 %v798_v1 }
  0x39   :  { %595 = vmatpush3.msra.mxu0 %v69_v14  ;;  %626 = vmatpush3.msra.mxu1 %v184_v33  ;;  %v298_v14 = vld [vmem:[#allocation5 + $0x128] sm:$0xff] }
  0x3a   :  { %596 = vmatprep.subr.mxu0 %v798_v1  ;;  %627 = vmatprep.subr.mxu1 %v798_v1 }
  0x3b   :  { %597 = vmatpush3.msra.mxu0 %v68_v15  ;;  %628 = vmatpush3.msra.mxu1 %v183_v34  ;;  %v297_v15 = vld [vmem:[#allocation5 + $0x120] sm:$0xff] }
  0x3c   :  { %598 = vmatprep.subr.mxu0 %v798_v1  ;;  %629 = vmatprep.subr.mxu1 %v798_v1 }
  0x3d   :  { %599 = vmatpush3.msra.mxu0 %v67_v16  ;;  %630 = vmatpush3.msra.mxu1 %v182_v35  ;;  %v296_v16 = vld [vmem:[#allocation5 + $0x118] sm:$0xff] }
  0x3e   :  { %600 = vmatprep.subr.mxu0 %v798_v1  ;;  %631 = vmatprep.subr.mxu1 %v798_v1  ;;  %v425_v35 = vld [vmem:[#allocation5 + $0x1f8] sm:$0xff] }
  0x3f   :  { %601 = vmatpush3.msra.mxu0 %v66_v17  ;;  %632 = vmatpush3.msra.mxu1 %v181_v36  ;;  %v295_v17 = vld [vmem:[#allocation5 + $0x110] sm:$0xff] }
  0x40   :  { %602 = vmatprep.subr.mxu0 %v798_v1  ;;  %633 = vmatprep.subr.mxu1 %v798_v1  ;;  %v918_v36 = vld [vmem:[#allocation7 + $0x10] sm:$0xff] }
  0x41   :  { %603 = vmatpush3.msra.mxu0 %v65_v18  ;;  %634 = vmatpush3.msra.mxu1 %v180_v37  ;;  %v294_v18 = vld [vmem:[#allocation5 + $0x108] sm:$0xff]  ;;  %v312_v37 = vrot.slane %v918_v36, %v886_v60 }
  0x42   :  { %604 = vmatprep.subr.mxu0 %v798_v1  ;;  %635 = vmatprep.subr.mxu1 %v798_v1 }
  0x43   :  { %605 = vmatpush3.msra.mxu0 %v64_v19  ;;  %636 = vmatpush3.msra.mxu1 %v179_v38  ;;  %v293_v19 = vld [vmem:[#allocation5 + $0x100] sm:$0xff] }
  0x44   :  { %606 = vmatprep.subr.mxu0 %v798_v1  ;;  %637 = vmatprep.subr.mxu1 %v798_v1 }
  0x45   :  { %607 = vmatpush3.msra.mxu0 %v63_v20  ;;  %638 = vmatpush3.msra.mxu1 %v178_v39 }
  0x46   :  { %609 = vmatmul.mubr.f32.vlgmr.msra.gmra.mxu0 %v61_v21  ;;  %646 = vmatprep.subr.mxu0 %v798_v1 }
  0x47   :  { %678 = vmatprep.mubr.msk.f32.mxu0 %vm799_vm0, %v798_v1  ;;  %639 = vmatprep.subr.mxu1 %v798_v1 }
  0x48   :  { %640 = vmatpush3.msra.mxu1 %v177_v40  ;;  %647 = vmatpush3.msra.mxu0 %v308_v4  ;;  %v399_v4 = vrot.slane %v918_v36, %v877_v50 }
  0x49   :  { %641 = vmatprep.subr.mxu1 %v798_v1  ;;  %648 = vmatprep.subr.mxu0 %v798_v1 }
  0x4a   :  { %642 = vmatpush3.msra.mxu1 %v176_v41  ;;  %649 = vmatpush3.msra.mxu0 %v307_v5 }
  0x4b   :  { %681 = vmatprep.subr.mxu1 %v798_v1  ;;  %650 = vmatprep.subr.mxu0 %v798_v1 }
  0x4c   :  { %651 = vmatpush3.msra.mxu0 %v306_v6 }
  0x4d   :  { %652 = vmatprep.subr.mxu0 %v798_v1 }
  0x4e   :  { %653 = vmatpush3.msra.mxu0 %v305_v7  ;;  %v404_v7 = vrot.slane %v918_v36, %v879_v52 }
  0x4f   :  { %654 = vmatprep.subr.mxu0 %v798_v1 }
  0x50   :  { %655 = vmatpush3.msra.mxu0 %v304_v8 }
  0x51   :  { %656 = vmatprep.subr.mxu0 %v798_v1 }
  0x52   :  { %657 = vmatpush3.msra.mxu0 %v303_v9 }
  0x53   :  { %658 = vmatprep.subr.mxu0 %v798_v1 }
  0x54   :  { %659 = vmatpush3.msra.mxu0 %v302_v10 }
  0x55   :  { %660 = vmatprep.subr.mxu0 %v798_v1 }
  0x56   :  { %661 = vmatpush3.msra.mxu0 %v301_v11  ;;  %v408_v11 = vld [vmem:[#allocation7 + $0x18] sm:$0xff] }
  0x57   :  { %662 = vmatprep.subr.mxu0 %v798_v1 }
  0x58   :  { %663 = vmatpush3.msra.mxu0 %v300_v12  ;;  %v429_v12 = vrot.slane %v408_v11, %v886_v60 }
  0x59   :  { %664 = vmatprep.subr.mxu0 %v798_v1 }
  0x5a   :  { %665 = vmatpush3.msra.mxu0 %v299_v13 }
  0x5b   :  { %666 = vmatprep.subr.mxu0 %v798_v1 }
  0x5c   :  { %667 = vmatpush3.msra.mxu0 %v298_v14 }
  0x5d   :  { %668 = vmatprep.subr.mxu0 %v798_v1 }
  0x5e   :  { %669 = vmatpush3.msra.mxu0 %v297_v15 }
  0x5f   :  { %670 = vmatprep.subr.mxu0 %v798_v1 }
  0x60   :  { %671 = vmatpush3.msra.mxu0 %v296_v16 }
  0x61   :  { %672 = vmatprep.subr.mxu0 %v798_v1 }
  0x62   :  { %673 = vmatpush3.msra.mxu0 %v295_v17 }
  0x63   :  { %674 = vmatprep.subr.mxu0 %v798_v1 }
  0x64   :  { %675 = vmatpush3.msra.mxu0 %v294_v18 }
  0x65   :  { %676 = vmatprep.subr.mxu0 %v798_v1 }
  0x66   :  { %677 = vmatpush3.msra.mxu0 %v293_v19 }
 0x106   :  { %v145_v23 = vpop.f32.mrf.mxu0 }
 0x107   :  { %v856_v24 = vmax.f32 %v145_v23, 0.0 }
 0x108   :  { %v610_v25 = vpop.f32.mrf.mxu0 }
 0x109   :  { %150 = vadd.xlane.f32.xlu0 %v856_v24  ;;  %v152_v26 = vmul.f32 %v856_v24, %v856_v24 }
 0x10d   :  { %153 = vadd.xlane.f32.xlu0 %v152_v26 }
 0x192   :  { %v151_v42 = vpop.xlane.xlu0 %150 }
 0x193   :  { %v155_v43 = vmul.f32 0.03125, %v151_v42  ;;  %v424_v42 = vld [vmem:[#allocation5 + $0x1f0] sm:$0xff] }
 0x195   :  { %v157_v45 = vmul.f32 %v155_v43, %v155_v43  ;;  %v161_v53 = vsub.f32 %v856_v24, %v155_v43  ;;  %v423_v43 = vld [vmem:[#allocation5 + $0x1e8] sm:$0xff] }
 0x196   :  { %v154_v44 = vpop.xlane.xlu0 %153 }
 0x197   :  { %v156_v46 = vmul.f32 0.03125, %v154_v44  ;;  %v422_v44 = vld [vmem:[#allocation5 + $0x1e0] sm:$0xff] }
 0x199   :  { %v158_v47 = vsub.f32 %v156_v46, %v157_v45  ;;  %v421_v45 = vld [vmem:[#allocation5 + $0x1d8] sm:$0xff]  ;;  %v420_v46 = vld [vmem:[#allocation5 + $0x1d0] sm:$0xff] }
 0x19b   :  { %v159_v48 = vadd.f32 1e-05, %v158_v47  ;;  %v419_v47 = vld [vmem:[#allocation5 + $0x1c8] sm:$0xff] }
 0x19d   :  { %723 = vrsqrt.f32 %v159_v48  ;;  %v418_v48 = vld [vmem:[#allocation5 + $0x1c0] sm:$0xff] }
 0x1aa   :  { %v724_v55 = vpop.eup %723 }
 0x1ab   :  { %v162_v56 = vmul.f32 %v724_v55, %v161_v53  ;;  %v415_v53 = vld [vmem:[#allocation5 + $0x1a8] sm:$0xff]  ;;  %v413_v55 = vld [vmem:[#allocation5 + $0x198] sm:$0xff] }
 0x1ad   :  { %v167_v58 = vmul.f32 %v166_v54, %v162_v56  ;;  %v414_v54 = vld [vmem:[#allocation5 + $0x1a0] sm:$0xff]  ;;  %v412_v56 = vld [vmem:[#allocation5 + $0x190] sm:$0xff] }
 0x1af   :  { %v172_v59 = vadd.f32 %v171_v57, %v167_v58  ;;  %v411_v57 = vld [vmem:[#allocation5 + $0x188] sm:$0xff]  ;;  %v410_v58 = vld [vmem:[#allocation5 + $0x180] sm:$0xff] }
 0x1b1   :  { %644 = vmatmul.mubr.f32.vlgmr.msra.gmra.mxu1 %v172_v59 }
 0x1b2   :  { %713 = vmatprep.mubr.msk.f32.mxu1 %vm799_vm0, %v798_v1  ;;  %682 = vmatpush3.msra.mxu1 %v425_v35 }
 0x1b3   :  { %683 = vmatprep.subr.mxu1 %v798_v1 }
 0x1b4   :  { %684 = vmatpush3.msra.mxu1 %v424_v42 }
 0x1b5   :  { %685 = vmatprep.subr.mxu1 %v798_v1 }
 0x1b6   :  { %686 = vmatpush3.msra.mxu1 %v423_v43 }
 0x1b7   :  { %687 = vmatprep.subr.mxu1 %v798_v1 }
 0x1b8   :  { %688 = vmatpush3.msra.mxu1 %v422_v44 }
 0x1b9   :  { %689 = vmatprep.subr.mxu1 %v798_v1 }
 0x1ba   :  { %690 = vmatpush3.msra.mxu1 %v421_v45 }
 0x1bb   :  { %691 = vmatprep.subr.mxu1 %v798_v1 }
 0x1bc   :  { %692 = vmatpush3.msra.mxu1 %v420_v46 }
 0x1bd   :  { %693 = vmatprep.subr.mxu1 %v798_v1 }
 0x1be   :  { %694 = vmatpush3.msra.mxu1 %v419_v47 }
 0x1bf   :  { %695 = vmatprep.subr.mxu1 %v798_v1 }
 0x1c0   :  { %696 = vmatpush3.msra.mxu1 %v418_v48 }
 0x1c1   :  { %697 = vmatprep.subr.mxu1 %v798_v1 }
 0x1c2   :  { %698 = vmatpush3.msra.mxu1 %v417_v49 }
 0x1c3   :  { %699 = vmatprep.subr.mxu1 %v798_v1 }
 0x1c4   :  { %700 = vmatpush3.msra.mxu1 %v416_v51 }
 0x1c5   :  { %701 = vmatprep.subr.mxu1 %v798_v1 }
 0x1c6   :  { %702 = vmatpush3.msra.mxu1 %v415_v53 }
 0x1c7   :  { %703 = vmatprep.subr.mxu1 %v798_v1 }
 0x1c8   :  { %704 = vmatpush3.msra.mxu1 %v414_v54 }
 0x1c9   :  { %705 = vmatprep.subr.mxu1 %v798_v1 }
 0x1ca   :  { %706 = vmatpush3.msra.mxu1 %v413_v55 }
 0x1cb   :  { %707 = vmatprep.subr.mxu1 %v798_v1 }
 0x1cc   :  { %708 = vmatpush3.msra.mxu1 %v412_v56 }
 0x1cd   :  { %709 = vmatprep.subr.mxu1 %v798_v1 }
 0x1ce   :  { %710 = vmatpush3.msra.mxu1 %v411_v57 }
 0x1cf   :  { %711 = vmatprep.subr.mxu1 %v798_v1 }
 0x1d0   :  { %712 = vmatpush3.msra.mxu1 %v410_v58 }
 0x271   :  { %v262_v63 = vpop.f32.mrf.mxu1 }
 0x272   :  { %v892_v0 = vadd.f32 %v262_v63, %v195_v62 }
 0x273   :  { %v645_v2 = vpop.f32.mrf.mxu1 }
 0x274   :  { %266 = vadd.xlane.f32.xlu1 %v892_v0  ;;  %v268_v3 = vmul.f32 %v892_v0, %v892_v0 }
 0x278   :  { %269 = vadd.xlane.f32.xlu1 %v268_v3 }
 0x2fd   :  { %v267_v20 = vpop.xlane.xlu1 %266 }
 0x2fe   :  { %v271_v21 = vmul.f32 0.0625, %v267_v20 }
 0x300   :  { %v273_v23 = vmul.f32 %v271_v21, %v271_v21  ;;  %v277_v28 = vsub.f32 %v892_v0, %v271_v21 }
 0x301   :  { %v270_v22 = vpop.xlane.xlu1 %269 }
 0x302   :  { %v272_v24 = vmul.f32 0.0625, %v270_v22 }
 0x304   :  { %v274_v25 = vsub.f32 %v272_v24, %v273_v23 }
 0x306   :  { %v275_v26 = vadd.f32 1e-05, %v274_v25 }
 0x308   :  { %725 = vrsqrt.f32 %v275_v26 }
 0x315   :  { %v726_v29 = vpop.eup %725 }
 0x316   :  { %v278_v31 = vmul.f32 %v726_v29, %v277_v28 }
 0x318   :  { %v283_v32 = vmul.f32 %v282_v27, %v278_v31 }
 0x31a   :  { %v288_v33 = vadd.f32 %v287_v30, %v283_v32 }
 0x31c   :  { %v289_v34 = vmax.f32 %v288_v33, 0.0 }
 0x31e   :  { %679 = vmatmul.mubr.f32.vlgmr.msra.gmra.mxu0 %v289_v34 }
 0x3de   :  { %v379_v38 = vpop.f32.mrf.mxu0 }
 0x3df   :  { %v380_v39 = vadd.f32 %v379_v38, %v312_v37 }
 0x3e0   :  { %v680_v40 = vpop.f32.mrf.mxu0 }
 0x3e1   :  { %383 = vadd.xlane.f32.xlu0 %v380_v39  ;;  %v385_v41 = vmul.f32 %v380_v39, %v380_v39 }
 0x3e3   :  { %386 = vadd.xlane.f32.xlu1 %v385_v41 }
 0x46a   :  { %v384_v59 = vpop.xlane.xlu0 %383 }
 0x46b   :  { %v388_v61 = vmul.f32 0.125, %v384_v59 }
 0x46c   :  { %v387_v62 = vpop.xlane.xlu1 %386 }
 0x46d   :  { %v390_v63 = vmul.f32 %v388_v61, %v388_v61  ;;  %v389_v0 = vmul.f32 0.125, %v387_v62  ;;  %v394_v5 = vsub.f32 %v380_v39, %v388_v61 }
 0x46f   :  { %v391_v2 = vsub.f32 %v389_v0, %v390_v63 }
 0x471   :  { %v392_v3 = vadd.f32 1e-05, %v391_v2 }
 0x473   :  { %727 = vrsqrt.f32 %v392_v3 }
 0x480   :  { %v728_v6 = vpop.eup %727 }
 0x481   :  { %v395_v8 = vmul.f32 %v728_v6, %v394_v5 }
 0x483   :  { %v400_v9 = vmul.f32 %v399_v4, %v395_v8 }
 0x485   :  { %v405_v1 = vadd.f32 %v404_v7, %v400_v9 }
 0x487   :  { %v406_v10 = vmax.f32 %v405_v1, 0.0 }
 0x489   :  { %714 = vmatmul.mubr.f32.vlgmr.msra.gmra.mxu1 %v406_v10 }
 0x549   :  { %v496_v13 = vpop.f32.mrf.mxu1 }
 0x54a   :  { %v497_v14 = vadd.f32 %v496_v13, %v429_v12 }
 0x54b   :  { %v715_v15 = vpop.f32.mrf.mxu1 }
 0x54c   :  { %501 = vst.msk [vmem:[%s947_s3] sm:$0xff] %vm500_vm3, %v497_v14 }
 0x54d   :  { %506 = vsyncpa [#allocation4], 1 }
 0x54e   :  { %507 = vsyncpa [#allocation6], 1 }

</bundles_post_ra>
